<compile_context>
chip_gen: v5e
topology: v5e:2x2
jax: 0.10.0
libtpu: 0.0.40
codegen_flags: <defaults>
</compile_context>

<pallas_src>
import jax
import jax.numpy as jnp
from jax.experimental import pallas as pl
from jax.experimental.pallas import tpu as pltpu


_LANES = 128
_SUBLANES = 8
_MAX_TILE_ROWS = 2048   # 2048 x 128 x 4B = 1 MiB per f32 block (x2 in x2 bufs = 4 MiB)
_NUM_SPLITS = 2         # outer 'parallel' axis: uses both v7x TCs; no-op elsewhere


def _round_up(x, m):
    return (x + m - 1) // m * m


def _mse_partial_kernel(x_ref, t_ref, psum_ref, acc_ref):
    """Accumulates sum((x - t)^2) for one row-split into psum_ref[0, 0].

    x_ref, t_ref: (TM, 128) tiles in VMEM (native input dtype).
    psum_ref:     (1, 1) f32 partial sum in SMEM (one block per split).
    acc_ref:      (8, 128) f32 VMEM scratch accumulator.
    """
    i = pl.program_id(1)

    @pl.when(i == 0)
    def _():
        acc_ref[...] = jnp.zeros_like(acc_ref)

    d = x_ref[...].astype(jnp.float32) - t_ref[...].astype(jnp.float32)
    sq = d * d
    # Steady-state work stays on VPU/vld slots: fold the (TM, 128) tile into
    # the (8, 128) accumulator with elementwise adds only.
    acc_ref[...] += jnp.sum(sq.reshape(-1, _SUBLANES, _LANES), axis=0)

    @pl.when(i == pl.num_programs(1) - 1)
    def _():
        # One cross-lane/sublane reduce per split, in the finalize branch only.
        psum_ref[0, 0] = jnp.sum(acc_ref[...])


def content_loss(x, target):
    """Pallas equivalent of ContentLoss.forward.

    Returns (input_passthrough, loss) where loss = mean((x - target)**2),
    matching F.mse_loss's default 'mean' reduction. The pass-through output is
    the unchanged input, as in the PyTorch module.
    """
    assert x.shape == target.shape, (x.shape, target.shape)
    n_true = x.size

    # Flatten -> pad (both operands, zeros => diff == 0 in the tail) -> (rows, 128).
    rows = pl.cdiv(n_true, _LANES)
    tm = min(_MAX_TILE_ROWS, _round_up(rows, _SUBLANES))
    total_tiles = pl.cdiv(rows, tm)
    num_splits = _NUM_SPLITS if total_tiles >= _NUM_SPLITS else 1
    tiles_per_split = pl.cdiv(total_tiles, num_splits)
    padded_rows = num_splits * tiles_per_split * tm
    padded_elems = padded_rows * _LANES

    def to_slab(a):
        flat = a.reshape(-1)
        if padded_elems != n_true:
            flat = jnp.pad(flat, (0, padded_elems - n_true))
        return flat.reshape(padded_rows, _LANES)

    x2 = to_slab(x)          # native dtype: bf16 inputs stay bf16 in HBM
    t2 = to_slab(target)

    in_bytes = padded_elems * (x2.dtype.itemsize + t2.dtype.itemsize)

    partial = pl.pallas_call(
        _mse_partial_kernel,
        out_shape=jax.ShapeDtypeStruct((num_splits, 1), jnp.float32),
        grid_spec=pltpu.PrefetchScalarGridSpec(
            num_scalar_prefetch=0,
            grid=(num_splits, tiles_per_split),
            in_specs=[
                pl.BlockSpec((tm, _LANES),
                             lambda c, i: (c * tiles_per_split + i, 0)),
                pl.BlockSpec((tm, _LANES),
                             lambda c, i: (c * tiles_per_split + i, 0)),
            ],
            out_specs=pl.BlockSpec((1, 1), lambda c, i: (c, 0),
                                   memory_space=pltpu.SMEM),
            scratch_shapes=[pltpu.VMEM((_SUBLANES, _LANES), jnp.float32)],
        ),
        compiler_params=pltpu.CompilerParams(
            dimension_semantics=("parallel", "arbitrary")),
        cost_estimate=pl.CostEstimate(
            flops=3 * padded_elems,
            bytes_accessed=in_bytes + 4 * num_splits,
            transcendentals=0),
    )(x2, t2)

    loss = jnp.sum(partial) / jnp.float32(n_true)
    # The module returns the input unchanged; `loss` mirrors `self.loss`.
    return x, loss


if __name__ == "__main__":
    key = jax.random.PRNGKey(0)

    def check(shape, k):
        kx, kt = jax.random.split(k)
        x = jax.random.normal(kx, shape, dtype=jnp.float32)
        t = jax.random.normal(kt, shape, dtype=jnp.float32)
        out, loss = content_loss(x, t)
        jax.block_until_ready(out)
        jax.block_until_ready(loss)
        ref = jnp.mean((x - t) ** 2)
        assert jnp.allclose(loss, ref, rtol=1e-4, atol=1e-6), (shape, loss, ref)
        assert jnp.array_equal(out, x)

    k0, k1, k2 = jax.random.split(key, 3)
    # Primary small NCHW case (lane-aligned): batch=2, channels=4, 16x16.
    check((2, 4, 16, 16), k0)
    # Non-multiple-of-128 element count -> exercises the zero-padding path.
    check((1, 3, 10, 10), k1)
    # Larger feature map -> exercises multi-tile pipelining + 2-way split.
    check((4, 16, 128, 128), k2)

    print("KERNEL_OK")
</pallas_src>

<mosaic_0001>
module attributes {stable_mosaic.version = 11 : i64} {
  func.func @_mse_partial_kernel(%arg0: i32, %arg1: i32, %arg2: memref<16x128xf32, #tpu.memory_space<vmem>>, %arg3: memref<16x128xf32, #tpu.memory_space<vmem>>, %arg4: memref<1x1xf32, #tpu.memory_space<smem>>, %arg5: memref<8x128xf32, #tpu.memory_space<vmem>>) attributes {dimension_semantics = [#tpu.dimension_semantics<parallel>, #tpu.dimension_semantics<arbitrary>], iteration_bounds = array<i64: 1, 1>, scalar_prefetch = 0 : i64, scratch_operands = 1 : i64, tpu.core_type = #tpu.core_type<tc>, window_params = [{transform_indices = @transform_0, window_bounds = array<i64: 16, 128>}, {transform_indices = @transform_1, window_bounds = array<i64: 16, 128>}, {transform_indices = @transform_2, window_bounds = array<i64: 1, 1>}]} {
    %c0_i32 = arith.constant 0 : i32
    %0 = arith.cmpi eq, %arg1, %c0_i32 : i32
    %1 = arith.extui %0 : i1 to i32
    %c0_i32_0 = arith.constant 0 : i32
    %2 = arith.cmpi ne, %1, %c0_i32_0 : i32
    scf.if %2 {
      %cst_10 = arith.constant 0.000000e+00 : f32
      %15 = vector.broadcast %cst_10 : f32 to vector<8x128xf32>
      %c0_11 = arith.constant 0 : index
      %c0_12 = arith.constant 0 : index
      %16 = vector.load %arg5[%c0_11, %c0_12] : memref<8x128xf32, #tpu.memory_space<vmem>>, vector<8x128xf32>
      tpu.vector_store %arg5[%c0_11, %c0_12], %15 {strides = array<i32>} : memref<8x128xf32, #tpu.memory_space<vmem>>, vector<8x128xf32>,
    } else {
    }
    %c0 = arith.constant 0 : index
    %c0_1 = arith.constant 0 : index
    %3 = vector.load %arg2[%c0, %c0_1] : memref<16x128xf32, #tpu.memory_space<vmem>>, vector<16x128xf32>
    %c0_2 = arith.constant 0 : index
    %c0_3 = arith.constant 0 : index
    %4 = vector.load %arg3[%c0_2, %c0_3] : memref<16x128xf32, #tpu.memory_space<vmem>>, vector<16x128xf32>
    %5 = arith.subf %3, %4 : vector<16x128xf32>
    %6 = arith.mulf %5, %5 : vector<16x128xf32>
    %c0_4 = arith.constant 0 : index
    %c0_5 = arith.constant 0 : index
    %7 = vector.load %arg5[%c0_4, %c0_5] : memref<8x128xf32, #tpu.memory_space<vmem>>, vector<8x128xf32>
    %8 = vector.shape_cast %6 : vector<16x128xf32> to vector<2x8x128xf32>
    %cst = arith.constant dense<0.000000e+00> : vector<8x128xf32>
    %9 = vector.multi_reduction <add>, %8, %cst [0] : vector<2x8x128xf32> to vector<8x128xf32>
    %10 = arith.addf %7, %9 : vector<8x128xf32>
    %c0_6 = arith.constant 0 : index
    %c0_7 = arith.constant 0 : index
    %11 = vector.load %arg5[%c0_6, %c0_7] : memref<8x128xf32, #tpu.memory_space<vmem>>, vector<8x128xf32>
    tpu.vector_store %arg5[%c0_6, %c0_7], %10 {strides = array<i32>} : memref<8x128xf32, #tpu.memory_space<vmem>>, vector<8x128xf32>,
    %c0_i32_8 = arith.constant 0 : i32
    %12 = arith.cmpi eq, %arg1, %c0_i32_8 : i32
    %13 = arith.extui %12 : i1 to i32
    %c0_i32_9 = arith.constant 0 : i32
    %14 = arith.cmpi ne, %13, %c0_i32_9 : i32
    scf.if %14 {
      %c0_10 = arith.constant 0 : index
      %c0_11 = arith.constant 0 : index
      %15 = vector.load %arg5[%c0_10, %c0_11] : memref<8x128xf32, #tpu.memory_space<vmem>>, vector<8x128xf32>
      %16 = vector.shape_cast %15 : vector<8x128xf32> to vector<1x8x128xf32>
      %cst_12 = arith.constant dense<0.000000e+00> : vector<1xf32>
      %17 = vector.multi_reduction <add>, %16, %cst_12 [1, 2] : vector<1x8x128xf32> to vector<1xf32>
      %18 = vector.shape_cast %17 : vector<1xf32> to vector<1x1x1xf32>
      %19 = vector.extract %18[0, 0, 0] : f32 from vector<1x1x1xf32>
      %c0_13 = arith.constant 0 : index
      %c0_14 = arith.constant 0 : index
      %20 = memref.load %arg4[%c0_13, %c0_14] : memref<1x1xf32, #tpu.memory_space<smem>>
      memref.store %19, %arg4[%c0_13, %c0_14] : memref<1x1xf32, #tpu.memory_space<smem>>
    } else {
    }
    return
  }
  func.func @transform_0(%arg0: i32, %arg1: i32) -> (i32, i32) {
    %c1_i32 = arith.constant 1 : i32
    %0 = arith.muli %arg0, %c1_i32 : i32
    %1 = arith.addi %0, %arg1 : i32
    %c0_i32 = arith.constant 0 : i32
    %c0_i32_0 = arith.constant 0 : i32
    return %1, %c0_i32 : i32, i32
  }
  func.func @transform_1(%arg0: i32, %arg1: i32) -> (i32, i32) {
    %c1_i32 = arith.constant 1 : i32
    %0 = arith.muli %arg0, %c1_i32 : i32
    %1 = arith.addi %0, %arg1 : i32
    %c0_i32 = arith.constant 0 : i32
    %c0_i32_0 = arith.constant 0 : i32
    return %1, %c0_i32 : i32, i32
  }
  func.func @transform_2(%arg0: i32, %arg1: i32) -> (i32, i32) {
    %c0_i32 = arith.constant 0 : i32
    %c0_i32_0 = arith.constant 0 : i32
    return %arg0, %c0_i32 : i32, i32
  }
}

</mosaic_0001>

<bundles_post_ra>
// kernel: tpu_custom_call.1
= control target key start
LH: loop header
LB: loop body
LE: loop exit
PB: predicated region body
PF: predicated region fallthrough
CT: control target
= control target key end

     0   :  { %7 = vsyncpa [#allocation4], 0  ;;  %s207_s0 = inlined_call_operand.hbm [shape: f32[16,128], index: 0, kind: input, shape index: {}]   ;;  %s208_s1 = inlined_call_operand.hbm [shape: f32[16,128], index: 1, kind: input, shape index: {}]   ;;  %s209_s2 = inlined_call_operand.hbm [shape: f32[1,1], index: 2, kind: output, shape index: {}]  }
   0x1   :  { %8 = vsyncpa [#allocation7], 0 }
   0x2   :  { %9 = vsyncpa [#allocation5], 0  ;;  %s18_s11 = sshll.u32 %s207_s0, 4  ;;  %s178_s12 = smov [#allocation3]   ;;  %s19_s11 = int_to_ptr.hbm [resolvable:$true] %s18_s11 }
   0x3   :  { %s20_s13 = sshll.u32 %s178_s12, 4  ;;  %s35_s16 = sshll.u32 %s208_s1, 4  ;;  %s21_s13 = int_to_ptr.vmem [resolvable:$true] %s20_s13  ;;  %s36_s16 = int_to_ptr.hbm [resolvable:$true] %s35_s16 }
   0x4   :  { %s179_s17 = smov 128   ;;  %s180_s18 = smov 8  }
   0x5   :  { %26 = dma.hbm_to_vmem [thread:$0]  %s19_s11, 256, %s21_s13, [#allocation4], %s179_s17, %s179_s17, %s180_s18  }
   0x6   :  { %s181_s19 = smov [#allocation6]  }
   0x7   :  { %s37_s20 = sshll.u32 %s181_s19, 4  ;;  %s38_s20 = int_to_ptr.vmem [resolvable:$true] %s37_s20 }
   0x8   :  { %43 = dma.hbm_to_vmem [thread:$0]  %s36_s16, 256, %s38_s20, [#allocation7], %s179_s17, %s179_s17, %s180_s18  }
   0x9   :  { %172 = dma.done.wait [#allocation4], 256  }
   0xa   :  { %173 = vsyncadd [#allocation4], 4294967040 }
   0xb   :  { %174 = dma.done.wait [#allocation7], 256  }
   0xc   :  { %175 = vsyncadd [#allocation7], 4294967040  ;;  %v61_v0 = vld [vmem:[#allocation3] sm:$0xff]  ;;  %v62_v1 = vld [vmem:[#allocation3 + $0x8] sm:$0xff]  ;;  %s93_s21 = sshll.u32 %s209_s2, 4  ;;  %s182_s23 = smov [#allocation8]   ;;  %s94_s21 = int_to_ptr.hbm [resolvable:$true] %s93_s21 }
   0xd   :  { %v63_v2 = vld [vmem:[#allocation6] sm:$0xff]  ;;  %v64_v3 = vld [vmem:[#allocation6 + $0x8] sm:$0xff] }
   0xe   :  { %v65_v4 = vsub.f32 %v61_v0, %v63_v2  ;;  %v66_v5 = vsub.f32 %v62_v1, %v64_v3 }
  0x10   :  { %v67_v6 = vmul.f32 %v65_v4, %v65_v4  ;;  %v68_v7 = vmul.f32 %v66_v5, %v66_v5 }
  0x12   :  { %v70_v8 = vadd.f32 %v68_v7, %v67_v6 }
  0x14   :  { %77 = vadd.xlane.f32.xlu0 %v70_v8 }
  0x87   :  { %v78_v9 = vpop.xlane.xlu0 %77 }
  0x88   :  { %v79_v10 = vrot.slane %v78_v9, 4 }
  0x8a   :  { %v80_v11 = vadd.f32 %v79_v10, %v78_v9 }
  0x8c   :  { %v81_v12 = vrot.slane %v80_v11, 2 }
  0x8e   :  { %v82_v13 = vadd.f32 %v81_v12, %v80_v11 }
  0x90   :  { %v83_v14 = vrot.slane %v82_v13, 1 }
  0x92   :  { %v84_v15 = vadd.f32 %v83_v14, %v82_v13 }
  0x94   :  { %105 = vpush %v84_v15 }
  0xc5   :  { %s106_s22 = spop %105 }
  0xc6   :  { %87 = sst [smem:[#allocation8]] %s106_s22 }
  0xc7   :  { %96 = dma.smem_to_hbm %s182_s23, 16, %s94_s21, [#allocation5]  }
  0xc8   :  { %176 = dma.done.wait [#allocation5], 16  }
  0xc9   :  { %177 = vsyncadd [#allocation5], 4294967280 }
  0xca   :  { %101 = sfence }
  0xcb   :  { %102 = vsyncpa [#allocation4], 1 }
  0xcc   :  { %103 = vsyncpa [#allocation7], 1 }
  0xcd   :  { %104 = vsyncpa [#allocation5], 1 }

</bundles_post_ra>
